<compile_context>
chip_gen: v7x
topology: tpu7x:2x2x1
jax: 0.10.0
libtpu: 0.0.40
codegen_flags: <defaults>
</compile_context>

<pallas_src>
import functools

import jax
import jax.numpy as jnp
from jax import lax
from jax.experimental import pallas as pl
from jax.experimental.pallas import tpu as pltpu


def _hash_u32(x):
    # lowbias32-style integer mix (xor-shift / multiply).  Runs on the VPU and
    # in interpret mode, unlike pltpu.prng_* which has no CPU lowering.
    x = x ^ (x >> 16)
    x = x * jnp.uint32(0x7FEB352D)
    x = x ^ (x >> 15)
    x = x * jnp.uint32(0x846CA68B)
    x = x ^ (x >> 16)
    return x


def _attn_kernel(seed_ref, q_ref, k_ref, v_ref, o_ref, *,
                 num_heads, seq_len, q_block, dropout_p):
    # q_ref: (tq, D) bf16, already scaled by 1/inv_scale_factor in the wrapper.
    # k_ref, v_ref: (S, D) bf16.
    # o_ref: (tq, D) f32 block stored directly into the [B, H, S, D] output.
    b = pl.program_id(0)
    h = pl.program_id(1)
    qi = pl.program_id(2)

    q = q_ref[...]
    k = k_ref[...]
    v = v_ref[...]

    # logits = (q / inv_scale_factor) @ k^T  -> (tq, S); MXU, f32 accumulation,
    # contraction over D on both operands (no explicit k transpose).
    logits = jnp.einsum("qd,kd->qk", q, k, preferred_element_type=jnp.float32)

    # Numerically stable softmax over keys (full key row resident -> exact).
    m = jnp.max(logits, axis=-1, keepdims=True)
    e = jnp.exp(logits - m)
    denom = jnp.sum(e, axis=-1, keepdims=True)
    probs = e / denom

    if dropout_p > 0.0:
        # Inverted dropout; keep-test in the integer domain.  Counter-based
        # hash keyed on (seed, b, h, global q index, key index) so every grid
        # step gets an independent, deterministic mask.
        seed_u = seed_ref[0].astype(jnp.uint32)
        q_glob = qi * q_block + lax.broadcasted_iota(
            jnp.int32, (q_block, seq_len), 0)
        k_idx = lax.broadcasted_iota(jnp.int32, (q_block, seq_len), 1)
        flat = ((b * num_heads + h) * seq_len + q_glob) * seq_len + k_idx
        bits = _hash_u32(flat.astype(jnp.uint32)
                         + seed_u * jnp.uint32(0x9E3779B9))
        thresh = jnp.uint32(min(int(dropout_p * 4294967296.0), 4294967295))
        probs = jnp.where(bits >= thresh, probs, 0.0)

    # output = dropout(softmax(qk)) @ v -> (tq, D), f32 accumulation.
    out = jnp.einsum("qk,kd->qd", probs.astype(jnp.bfloat16), v,
                     preferred_element_type=jnp.float32)
    if dropout_p > 0.0:
        # 1/(1-p) rescale applied after the matmul (smaller (tq, D) tile).
        out = out * jnp.float32(1.0 / (1.0 - dropout_p))

    o_ref[...] = out.astype(o_ref.dtype)


def sdpa_pallas(query, key, value, seed, *, inv_scale_factor, dropout_p):
    B, H, S, D = query.shape
    assert key.shape == (B, H, S, D) and value.shape == (B, H, S, D)

    # Query tile: 128 rows when it divides S, else whole sequence (block dim
    # equal to the full array dim always satisfies the (8,128) constraint).
    tq = 128 if (S % 128 == 0) else S

    # Fold the scale into q and cast inputs to bf16 *outside* the kernel:
    # halves HBM->VMEM DMA and the input double-buffer footprint.
    scale = jnp.float32(1.0 / float(inv_scale_factor))
    q_in = (query.astype(jnp.float32) * scale).astype(jnp.bfloat16)
    k_in = key.astype(jnp.bfloat16)
    v_in = value.astype(jnp.bfloat16)

    kernel = functools.partial(
        _attn_kernel,
        num_heads=H, seq_len=S, q_block=tq, dropout_p=float(dropout_p),
    )

    q_spec = pl.BlockSpec(
        (pl.Squeezed(), pl.Squeezed(), tq, D),
        lambda b, h, qi, seed_ref: (b, h, qi, 0),
    )
    kv_spec = pl.BlockSpec(
        (pl.Squeezed(), pl.Squeezed(), S, D),
        lambda b, h, qi, seed_ref: (b, h, 0, 0),
    )
    out_spec = pl.BlockSpec(
        (pl.Squeezed(), pl.Squeezed(), tq, D),
        lambda b, h, qi, seed_ref: (b, h, qi, 0),
    )

    # Advisory cost estimate (two matmuls + exp) for the XLA scheduler.
    flops = 2 * 2 * B * H * S * S * D
    transcendentals = B * H * S * S
    bytes_accessed = 3 * B * H * S * D * 2 + B * H * S * D * 4

    # Scoped-VMEM limit sized from the actual tiles (with headroom), kept
    # within the smallest physical VMEM across generations (v7x: 64 MiB).
    step_vmem = (2 * (tq * D * 2 + 2 * S * D * 2)   # bf16 q/k/v, double-buffered
                 + 2 * tq * D * 4                   # f32 out, double-buffered
                 + 4 * tq * S * 4)                  # logits/e/probs/bits live
    vmem_limit = int(min(max(2 * step_vmem, 32 * 1024 * 1024),
                         64 * 1024 * 1024))

    out = pl.pallas_call(
        kernel,
        out_shape=jax.ShapeDtypeStruct((B, H, S, D), jnp.float32),
        grid_spec=pltpu.PrefetchScalarGridSpec(
            num_scalar_prefetch=1,
            grid=(B, H, S // tq),
            in_specs=[q_spec, kv_spec, kv_spec],
            out_specs=out_spec,
        ),
        compiler_params=pltpu.CompilerParams(
            dimension_semantics=("parallel", "parallel", "parallel"),
            vmem_limit_bytes=vmem_limit,
        ),
        cost_estimate=pl.CostEstimate(
            flops=flops,
            transcendentals=transcendentals,
            bytes_accessed=bytes_accessed,
        ),
    )(seed, q_in, k_in, v_in)

    return out  # already [B, H, S, D]; no wrapper-side transpose


if __name__ == "__main__":
    # Small, deterministic example shapes consistent with the forward pass.
    B, H, S, D = 2, 2, 128, 64
    inv_scale_factor = float(D) ** 0.5   # usual sqrt(d_k) divisor
    dropout_p = 0.1

    key0 = jax.random.PRNGKey(0)
    kq, kk, kv = jax.random.split(key0, 3)
    query = jax.random.normal(kq, (B, H, S, D), dtype=jnp.float32)
    key_ = jax.random.normal(kk, (B, H, S, D), dtype=jnp.float32)
    value = jax.random.normal(kv, (B, H, S, D), dtype=jnp.float32)
    seed = jnp.array([1234], dtype=jnp.int32)

    # Eval-mode (p=0) correctness check vs. a pure-JAX reference.
    # (bf16 MXU operands are an intentional, small deviation from f32 torch.)
    out_eval = sdpa_pallas(query, key_, value, seed,
                           inv_scale_factor=inv_scale_factor, dropout_p=0.0)
    logits_ref = jnp.einsum("bhqd,bhkd->bhqk", query, key_) / inv_scale_factor
    ref = jnp.einsum("bhqk,bhkd->bhqd",
                     jax.nn.softmax(logits_ref, axis=-1), value)
    assert out_eval.shape == (B, H, S, D)
    assert bool(jnp.allclose(out_eval, ref, atol=3e-2, rtol=3e-2))

    # Train-mode run with dropout (hash-PRNG mask; cannot bit-match torch RNG).
    out = sdpa_pallas(query, key_, value, seed,
                      inv_scale_factor=inv_scale_factor, dropout_p=dropout_p)
    jax.block_until_ready(out)
    assert out.shape == (B, H, S, D)
    assert bool(jnp.all(jnp.isfinite(out)))
    print("KERNEL_OK")
</pallas_src>

<mosaic_0001>
module attributes {stable_mosaic.version = 11 : i64} {
  func.func @_attn_kernel(%arg0: i32, %arg1: i32, %arg2: i32, %arg3: memref<1xi32, #tpu.memory_space<smem>>, %arg4: memref<1x1x128x64xbf16, #tpu.memory_space<vmem>>, %arg5: memref<1x1x128x64xbf16, #tpu.memory_space<vmem>>, %arg6: memref<1x1x128x64xbf16, #tpu.memory_space<vmem>>, %arg7: memref<1x1x128x64xf32, #tpu.memory_space<vmem>>) attributes {dimension_semantics = [#tpu.dimension_semantics<parallel>, #tpu.dimension_semantics<parallel>, #tpu.dimension_semantics<parallel>], iteration_bounds = array<i64: 2, 2, 1>, scalar_prefetch = 1 : i64, scratch_operands = 0 : i64, tpu.core_type = #tpu.core_type<tc>, window_params = [{transform_indices = @transform_0, window_bounds = array<i64: 1, 1, 128, 64>}, {transform_indices = @transform_1, window_bounds = array<i64: 1, 1, 128, 64>}, {transform_indices = @transform_2, window_bounds = array<i64: 1, 1, 128, 64>}, {transform_indices = @transform_3, window_bounds = array<i64: 1, 1, 128, 64>}]} {
    %c0 = arith.constant 0 : index
    %c0_0 = arith.constant 0 : index
    %c0_1 = arith.constant 0 : index
    %c0_2 = arith.constant 0 : index
    %0 = vector.load %arg4[%c0, %c0_0, %c0_1, %c0_2] : memref<1x1x128x64xbf16, #tpu.memory_space<vmem>>, vector<1x1x128x64xbf16>
    %1 = vector.shape_cast %0 : vector<1x1x128x64xbf16> to vector<128x64xbf16>
    %c0_3 = arith.constant 0 : index
    %c0_4 = arith.constant 0 : index
    %c0_5 = arith.constant 0 : index
    %c0_6 = arith.constant 0 : index
    %2 = vector.load %arg5[%c0_3, %c0_4, %c0_5, %c0_6] : memref<1x1x128x64xbf16, #tpu.memory_space<vmem>>, vector<1x1x128x64xbf16>
    %3 = vector.shape_cast %2 : vector<1x1x128x64xbf16> to vector<128x64xbf16>
    %c0_7 = arith.constant 0 : index
    %c0_8 = arith.constant 0 : index
    %c0_9 = arith.constant 0 : index
    %c0_10 = arith.constant 0 : index
    %4 = vector.load %arg6[%c0_7, %c0_8, %c0_9, %c0_10] : memref<1x1x128x64xbf16, #tpu.memory_space<vmem>>, vector<1x1x128x64xbf16>
    %5 = vector.shape_cast %4 : vector<1x1x128x64xbf16> to vector<128x64xbf16>
    "tpu.trace_start"() <{level = 10 : i32, message = "qd,kd->qk"}> : () -> ()
    %cst = arith.constant dense<0.000000e+00> : vector<128x128xf32>
    %6 = tpu.matmul %1, %3, %cst {dimension_numbers = #tpu.dot_dimension_numbers<[1], [1], [0], [0], [0, 0, 1, 0], [], []>} : vector<128x64xbf16>, vector<128x64xbf16>, vector<128x128xf32> -> vector<128x128xf32>
    "tpu.trace_stop"() : () -> ()
    %cst_11 = arith.constant dense<0xFF800000> : vector<128xf32>
    %7 = vector.multi_reduction <maximumf>, %6, %cst_11 [1] : vector<128x128xf32> to vector<128xf32>
    %8 = vector.shape_cast %7 : vector<128xf32> to vector<128x1xf32>
    %9 = vector.broadcast %8 : vector<128x1xf32> to vector<128x128xf32>
    %10 = arith.subf %6, %9 : vector<128x128xf32>
    %11 = math.exp %10 : vector<128x128xf32>
    %cst_12 = arith.constant dense<0.000000e+00> : vector<128xf32>
    %12 = vector.multi_reduction <add>, %11, %cst_12 [1] : vector<128x128xf32> to vector<128xf32>
    %13 = vector.shape_cast %12 : vector<128xf32> to vector<128x1xf32>
    %14 = vector.broadcast %13 : vector<128x1xf32> to vector<128x128xf32>
    %15 = arith.divf %11, %14 : vector<128x128xf32>
    %16 = arith.truncf %15 : vector<128x128xf32> to vector<128x128xbf16>
    "tpu.trace_start"() <{level = 10 : i32, message = "qk,kd->qd"}> : () -> ()
    %cst_13 = arith.constant dense<0.000000e+00> : vector<128x64xf32>
    %17 = tpu.matmul %16, %5, %cst_13 {dimension_numbers = #tpu.dot_dimension_numbers<[1], [0], [0], [1], [0, 0, 1, 1], [], []>} : vector<128x128xbf16>, vector<128x64xbf16>, vector<128x64xf32> -> vector<128x64xf32>
    "tpu.trace_stop"() : () -> ()
    %c0_14 = arith.constant 0 : index
    %c0_15 = arith.constant 0 : index
    %c0_16 = arith.constant 0 : index
    %c0_17 = arith.constant 0 : index
    %18 = vector.load %arg7[%c0_14, %c0_15, %c0_16, %c0_17] : memref<1x1x128x64xf32, #tpu.memory_space<vmem>>, vector<1x1x128x64xf32>
    %19 = vector.shape_cast %18 : vector<1x1x128x64xf32> to vector<128x64xf32>
    %20 = vector.shape_cast %17 : vector<128x64xf32> to vector<1x1x128x64xf32>
    tpu.vector_store %arg7[%c0_14, %c0_15, %c0_16, %c0_17], %20 {strides = array<i32>} : memref<1x1x128x64xf32, #tpu.memory_space<vmem>>, vector<1x1x128x64xf32>,
    return
  }
  func.func @transform_0(%arg0: i32, %arg1: i32, %arg2: i32, %arg3: memref<1xi32, #tpu.memory_space<smem>>) -> (i32, i32, i32, i32) {
    %c0_i32 = arith.constant 0 : i32
    %c0_i32_0 = arith.constant 0 : i32
    return %arg0, %arg1, %arg2, %c0_i32 : i32, i32, i32, i32
  }
  func.func @transform_1(%arg0: i32, %arg1: i32, %arg2: i32, %arg3: memref<1xi32, #tpu.memory_space<smem>>) -> (i32, i32, i32, i32) {
    %c0_i32 = arith.constant 0 : i32
    %c0_i32_0 = arith.constant 0 : i32
    %c0_i32_1 = arith.constant 0 : i32
    return %arg0, %arg1, %c0_i32, %c0_i32_0 : i32, i32, i32, i32
  }
  func.func @transform_2(%arg0: i32, %arg1: i32, %arg2: i32, %arg3: memref<1xi32, #tpu.memory_space<smem>>) -> (i32, i32, i32, i32) {
    %c0_i32 = arith.constant 0 : i32
    %c0_i32_0 = arith.constant 0 : i32
    %c0_i32_1 = arith.constant 0 : i32
    return %arg0, %arg1, %c0_i32, %c0_i32_0 : i32, i32, i32, i32
  }
  func.func @transform_3(%arg0: i32, %arg1: i32, %arg2: i32, %arg3: memref<1xi32, #tpu.memory_space<smem>>) -> (i32, i32, i32, i32) {
    %c0_i32 = arith.constant 0 : i32
    %c0_i32_0 = arith.constant 0 : i32
    return %arg0, %arg1, %arg2, %c0_i32 : i32, i32, i32, i32
  }
}

</mosaic_0001>

<bundles_post_ra>
// kernel: tpu_custom_call.1
= control target key start
LH: loop header
LB: loop body
LE: loop exit
PB: predicated region body
PF: predicated region fallthrough
CT: control target
= control target key end

     0   :  { %s1404_s15 = smov 0   ;;  %s1406_s16 = smov 0   ;;  %s1658_s0 = inlined_call_operand.<no memory space> [shape: s32[1], index: 0, kind: input, shape index: {}]   ;;  %s1659_s1 = inlined_call_operand.vmem [shape: bf16[2,2,128,64], index: 1, kind: input, shape index: {}]   ;;  %s1660_s2 = inlined_call_operand.vmem [shape: bf16[2,2,128,64], index: 2, kind: input, shape index: {}]   ;;  %s1661_s3 = inlined_call_operand.vmem [shape: bf16[2,2,128,64], index: 3, kind: input, shape index: {}]   ;;  %s1662_s4 = inlined_call_operand.vmem [shape: f32[2,2,128,64], index: 4, kind: output, shape index: {}]  }
   0x1   :  { %s1408_s17 = smov 0   ;;  %s1410_s18 = smov 0  }
   0x2   :  { %s1412_s0 = smov 0  }
   0x3 LB: > { %s30_s19 = sadd.s32 1, %s1369_s17  ;;  %s34_s20 = sadd.s32 1, %s1373_s18  ;;  %s1377_s0 = sphi %s1412_s0, %s15_s0   ;;  %s1373_s18 = sphi %s1410_s18, %s1666_s18   ;;  %s1369_s17 = sphi %s1408_s17, %s1665_s17   ;;  %s1365_s16 = sphi %s1406_s16, %s1664_s16   ;;  %s1361_s15 = sphi %s1404_s15, %s1663_s15  }
   0x4   : > { %p32_p0 = scmp.ge.s32.totalorder %s30_s19, 2  ;;  %p1060_p1 = scmp.ge.s32.totalorder %s1377_s0, 1 }
   0x5   : > { %p207_p2 = scmp.lt.s32.totalorder %s1377_s0, 5 }
   0x6   : > { %s1668_s19 = smov (%p32_p0, %s30_s19), 0  ;;  %s1670_s20 = smov (!%p32_p0, %s34_s20), %s1373_s18 }
   0x7   : > { %p208_p3 = pnand %p1060_p1, %p207_p2  ;;  %p36_p4 = scmp.ge.s32.totalorder %s1670_s20, 2 }
   0x8   : > { %p266_p5 = scmp.lt.s32.totalorder (!%p208_p3), %s1365_s16, 1  ;;  %p268_p6 = scmp.lt.s32.totalorder (!%p208_p3), %s1361_s15, 1  ;;  %vm440_vm0 = vcmask (!%p208_p3), 523264  }
   0x9   : > { %s1672_s20 = smov (%p36_p4, %s1670_s20), 0  ;;  %211 = sbr.rel (%p208_p3) target bundleno = 861 (0x35d), region = 32 }
  0x10   : > { %s1674_s16 = smov (!%p266_p5, %s1365_s16), 1  ;;  %s1676_s15 = smov (!%p268_p6, %s1361_s15), 1 }
  0x11   : > { %s1062_s21 = sshll.u32 %s1674_s16, 5  ;;  %s1061_s22 = sshll.u32 %s1676_s15, 4 }
  0x12   : > { %s1434_s23 = sadd.s32 %s1062_s21, %s1061_s22 }
  0x13   : > { %s1437_s24 = sshll.u32 %s1434_s23, 2  ;;  %s1072_s8 = sshll.u32 %s1434_s23, 3 }
  0x14   : > { %s1443_s27 = scalar_lea.vmem %s1660_s2, %s1437_s24  ;;  %s1454_s30 = scalar_lea.vmem %s1659_s1, %s1437_s24 }
  0x15   : > { %v1251_v0 = vld [vmem:[%s1443_s27] sm:$0xff]   ;;  %v1252_v1 = vld [vmem:[%s1443_s27 + $0x8] sm:$0xff]   ;;  %v1253_v3 = vld [vmem:[%s1443_s27 + $0x10] sm:$0xff]   ;;  %s1522_s7 = scalar_lea.vmem %s1661_s3, %s1437_s24  ;;  %s1609_s11 = scalar_lea.vmem %s1662_s4, %s1072_s8 }
  0x16   : > { %1203 = vmatprep.subr.msk.bf16.mxu0 %vm440_vm0, %v1251_v0  ;;  %v466_v2 = vsel %vm440_vm0, %v1251_v0, 0  ;;  %v469_v4 = vsel %vm440_vm0, %v1252_v1, 0  ;;  %v1259_v5 = vld [vmem:[%s1454_s30] sm:$0xff]   ;;  %v472_v6 = vsel %vm440_vm0, %v1253_v3, 0  ;;  %v1254_v7 = vld [vmem:[%s1443_s27 + $0x18] sm:$0xff]   ;;  %v1256_v11 = vld [vmem:[%s1443_s27 + $0x28] sm:$0xff]  }
  0x17   : > { %1140 = vmatpush3.bf16.xpose.msra.mxu0 %v466_v2  ;;  %1155 = vmatprep.mubr.msk.bf16.mxu0 %vm440_vm0, %v1259_v5  ;;  %v475_v8 = vsel %vm440_vm0, %v1254_v7, 0  ;;  %v1255_v9 = vld [vmem:[%s1443_s27 + $0x20] sm:$0xff]   ;;  %v481_v12 = vsel %vm440_vm0, %v1256_v11, 0  ;;  %v1257_v13 = vld [vmem:[%s1443_s27 + $0x30] sm:$0xff]   ;;  %v1258_v15 = vld [vmem:[%s1443_s27 + $0x38] sm:$0xff]  }
  0x18   : > { %1204 = vmatprep.subr.msk.bf16.mxu0 %vm440_vm0, %v1252_v1  ;;  %v478_v10 = vsel %vm440_vm0, %v1255_v9, 0  ;;  %v484_v14 = vsel %vm440_vm0, %v1257_v13, 0  ;;  %v487_v16 = vsel %vm440_vm0, %v1258_v15, 0  ;;  %v1260_v17 = vld [vmem:[%s1454_s30 + $0x8] sm:$0xff]   ;;  %v1261_v18 = vld [vmem:[%s1454_s30 + $0x10] sm:$0xff]   ;;  %v1262_v19 = vld [vmem:[%s1454_s30 + $0x18] sm:$0xff]  }
  0x19   : > { %v1263_v20 = vld [vmem:[%s1454_s30 + $0x20] sm:$0xff]   ;;  %v1264_v21 = vld [vmem:[%s1454_s30 + $0x28] sm:$0xff]   ;;  %v1265_v22 = vld [vmem:[%s1454_s30 + $0x30] sm:$0xff]  }
  0x1a   : > { %v1266_v23 = vld [vmem:[%s1454_s30 + $0x38] sm:$0xff]   ;;  %v1267_v40 = vld [vmem:[%s1522_s7] sm:$0xff]   ;;  %v1268_v41 = vld [vmem:[%s1522_s7 + $0x8] sm:$0xff]  }
  0x1b   : > { %1171 = vmatprep.subr.bf16.mxu1 %v1267_v40  ;;  %v1269_v42 = vld [vmem:[%s1522_s7 + $0x10] sm:$0xff]  }
  0x1c   : > { %1172 = vmatpush3.bf16.msra.mxu1 %v1267_v40  ;;  %v1271_v40 = vld [vmem:[%s1522_s7 + $0x20] sm:$0xff]  }
  0x1d   : > { %1173 = vmatprep.subr.bf16.mxu1 %v1268_v41 }
  0x1f   : > { %1142 = vmatpush3.bf16.xpose.msra.mxu0 %v469_v4 }
  0x20   : > { %1205 = vmatprep.subr.msk.bf16.mxu0 %vm440_vm0, %v1253_v3  ;;  %1174 = vmatpush3.bf16.msra.mxu1 %v1268_v41 }
  0x21   : > { %1175 = vmatprep.subr.bf16.mxu1 %v1269_v42 }
  0x24   : > { %1176 = vmatpush3.bf16.msra.mxu1 %v1269_v42  ;;  %v1272_v42 = vld [vmem:[%s1522_s7 + $0x28] sm:$0xff]  }
  0x27   : > { %1144 = vmatpush3.bf16.xpose.msra.mxu0 %v472_v6 }
  0x28   : > { %1206 = vmatprep.subr.msk.bf16.mxu0 %vm440_vm0, %v1254_v7 }
  0x2f   : > { %1146 = vmatpush3.bf16.xpose.msra.mxu0 %v475_v8 }
  0x30   : > { %1207 = vmatprep.subr.msk.bf16.mxu0 %vm440_vm0, %v1255_v9 }
  0x37   : > { %1148 = vmatpush3.bf16.xpose.msra.mxu0 %v478_v10 }
  0x38   : > { %1208 = vmatprep.subr.msk.bf16.mxu0 %vm440_vm0, %v1256_v11 }
  0x3f   : > { %1150 = vmatpush3.bf16.xpose.msra.mxu0 %v481_v12 }
  0x40   : > { %1209 = vmatprep.subr.msk.bf16.mxu0 %vm440_vm0, %v1257_v13 }
  0x47   : > { %1152 = vmatpush3.bf16.xpose.msra.mxu0 %v484_v14 }
  0x48   : > { %1210 = vmatprep.subr.msk.bf16.mxu0 %vm440_vm0, %v1258_v15 }
  0x4f   : > { %1154 = vmatpush3.bf16.xpose.msra.mxu0 %v487_v16 }
  0x56   : > { %1156 = vmatmul.mubr.msk.bf16.vlgmr.msra.gmra.mrb[0].mxu0 %vm440_vm0, %v1260_v17 }
  0x57   : > { %1159 = vmatprep.mubr.msk.bf16.mxu0 %vm440_vm0, %v1261_v18 }
  0x5e   : > { %1160 = vmatmul.mubr.msk.bf16.gmra.mrb[4].mxu0 %vm440_vm0, %v1262_v19 }
  0x5f   : > { %1163 = vmatprep.mubr.msk.bf16.mxu0 %vm440_vm0, %v1263_v20 }
  0x66   : > { %1164 = vmatmul.mubr.msk.bf16.gmra.mrb[8].mxu0 %vm440_vm0, %v1264_v21 }
  0x67   : > { %1167 = vmatprep.mubr.msk.bf16.mxu0 %vm440_vm0, %v1265_v22 }
  0x6e   : > { %1168 = vmatmul.mubr.msk.bf16.gmra.mrb[12].mxu0 %vm440_vm0, %v1266_v23 }
 0x129   : > { %v1157_v24 = vpop.f32.mrb[0].mxu0 }
 0x12a   : > { %590 = vmax.xlane.f32.xlu1 %v1157_v24  ;;  %v523_v25 = vpop.f32.mrb[1].mxu0 }
 0x12b   : > { %586 = vmax.xlane.f32.xlu0 %v523_v25  ;;  %v1158_v26 = vpop.f32.mrb[2].mxu0 }
 0x12c   : > { %v526_v27 = vpop.f32.mrb[3].mxu0 }
 0x12e   : > { %592 = vmax.xlane.f32.xlu1 %v1158_v26 }
 0x12f   : > { %588 = vmax.xlane.f32.xlu0 %v526_v27 }
 0x131   : > { %v1161_v28 = vpop.f32.mrb[4].mxu0 }
 0x132   : > { %v539_v29 = vpop.f32.mrb[5].mxu0 }
 0x133   : > { %594 = vmax.xlane.f32.xlu0 %v539_v29  ;;  %v1491_v30 = vpop.f32.mrb[6].mxu0 }
 0x134   : > { %v542_v31 = vpop.f32.mrb[7].mxu0 }
 0x135   : > { %596 = vmax.xlane.f32.xlu1 %v542_v31 }
 0x137   : > { %598 = vmax.xlane.f32.xlu0 %v1161_v28 }
 0x139   : > { %600 = vmax.xlane.f32.xlu1 %v1491_v30  ;;  %v1494_v32 = vpop.f32.mrb[8].mxu0 }
 0x13a   : > { %v1496_v33 = vpop.f32.mrb[9].mxu0 }
 0x13b   : > { %602 = vmax.xlane.f32.xlu0 %v1496_v33  ;;  %v1499_v34 = vpop.f32.mrb[10].mxu0 }
 0x13c   : > { %v1501_v35 = vpop.f32.mrb[11].mxu0 }
 0x13d   : > { %604 = vmax.xlane.f32.xlu1 %v1501_v35 }
 0x13f   : > { %606 = vmax.xlane.f32.xlu0 %v1494_v32 }
 0x141   : > { %608 = vmax.xlane.f32.xlu1 %v1499_v34  ;;  %v1506_v36 = vpop.f32.mrb[12].mxu0 }
 0x142   : > { %v1508_v37 = vpop.f32.mrb[13].mxu0 }
 0x143   : > { %610 = vmax.xlane.f32.xlu0 %v1508_v37  ;;  %v1511_v38 = vpop.f32.mrb[14].mxu0 }
 0x144   : > { %v1513_v39 = vpop.f32.mrb[15].mxu0 }
 0x145   : > { %612 = vmax.xlane.f32.xlu1 %v1513_v39 }
 0x147   : > { %614 = vmax.xlane.f32.xlu0 %v1506_v36 }
 0x149   : > { %616 = vmax.xlane.f32.xlu1 %v1511_v38 }
 0x1b7   : > { %v591_v43 = vpop.xlane.xlu1 %590 }
 0x1b8   : > { %v620_v44 = vsub.f32 %v1157_v24, %v591_v43  ;;  %v587_v45 = vpop.xlane.xlu0 %586 }
 0x1b9   : > { %v618_v46 = vsub.f32 %v523_v25, %v587_v45  ;;  %v1273_v45 = vld [vmem:[%s1522_s7 + $0x30] sm:$0xff]  }
 0x1ba   : > { %v638_v49 = vmul.f32 1.442695, %v620_v44 }
 0x1bb   : > { %v634_v47 = vmul.f32 1.442695, %v618_v46  ;;  %v593_v48 = vpop.xlane.xlu1 %592 }
 0x1bc   : > { %v621_v50 = vsub.f32 %v1158_v26, %v593_v48  ;;  %v589_v51 = vpop.xlane.xlu0 %588 }
 0x1bd   : > { %1275 = vpow2.f32 %v634_v47  ;;  %v619_v52 = vsub.f32 %v526_v27, %v589_v51  ;;  %v1274_v47 = vld [vmem:[%s1522_s7 + $0x38] sm:$0xff]  }
 0x1be   : > { %1277 = vpow2.f32 %v638_v49  ;;  %v640_v54 = vmul.f32 1.442695, %v621_v50 }
 0x1bf   : > { %v636_v53 = vmul.f32 1.442695, %v619_v52 }
 0x1c0   : > { %v595_v55 = vpop.xlane.xlu0 %594 }
 0x1c1   : > { %1279 = vpow2.f32 %v636_v53  ;;  %v622_v56 = vsub.f32 %v539_v29, %v595_v55 }
 0x1c2   : > { %v597_v57 = vpop.xlane.xlu1 %596  ;;  %1281 = vpow2.f32 %v640_v54 }
 0x1c3   : > { %v642_v58 = vmul.f32 1.442695, %v622_v56  ;;  %v623_v59 = vsub.f32 %v542_v31, %v597_v57 }
 0x1c4   : > { %v599_v60 = vpop.xlane.xlu0 %598 }
 0x1c5   : > { %1283 = vpow2.f32 %v642_v58  ;;  %v644_v61 = vmul.f32 1.442695, %v623_v59  ;;  %v624_v62 = vsub.f32 %v1161_v28, %v599_v60 }
 0x1c6   : > { %v601_v63 = vpop.xlane.xlu1 %600 }
 0x1c7   : > { %v1527_v0 = vpop.eup %1275  ;;  %v646_v1 = vmul.f32 1.442695, %v624_v62  ;;  %v625_v2 = vsub.f32 %v1491_v30, %v601_v63  ;;  %1285 = vpow2.f32 %v644_v61 }
 0x1c8   : > { %v603_v3 = vpop.xlane.xlu0 %602  ;;  %666 = vadd.xlane.f32.xlu0 %v1527_v0  ;;  %v1532_v6 = vpop.eup %1277 }
 0x1c9   : > { %1287 = vpow2.f32 %v646_v1  ;;  %v648_v4 = vmul.f32 1.442695, %v625_v2  ;;  %v626_v5 = vsub.f32 %v1496_v33, %v603_v3 }
 0x1ca   : > { %v605_v7 = vpop.xlane.xlu1 %604 }
 0x1cb   : > { %v1534_v8 = vpop.eup %1279  ;;  %v650_v9 = vmul.f32 1.442695, %v626_v5  ;;  %v627_v10 = vsub.f32 %v1501_v35, %v605_v7  ;;  %1289 = vpow2.f32 %v648_v4 }
 0x1cc   : > { %v607_v11 = vpop.xlane.xlu0 %606  ;;  %670 = vadd.xlane.f32.xlu0 %v1532_v6  ;;  %668 = vadd.xlane.f32.xlu1 %v1534_v8  ;;  %v1540_v14 = vpop.eup %1281 }
 0x1cd   : > { %1291 = vpow2.f32 %v650_v9  ;;  %v652_v12 = vmul.f32 1.442695, %v627_v10  ;;  %v628_v13 = vsub.f32 %v1494_v32, %v607_v11  ;;  %v1270_v32 = vld [vmem:[%s1522_s7 + $0x18] sm:$0xff]  }
 0x1ce   : > { %v609_v15 = vpop.xlane.xlu1 %608  ;;  %1177 = vmatprep.subr.bf16.mxu1 %v1270_v32 }
 0x1cf   : > { %v1542_v16 = vpop.eup %1283  ;;  %v654_v17 = vmul.f32 1.442695, %v628_v13  ;;  %v629_v18 = vsub.f32 %v1499_v34, %v609_v15  ;;  %1293 = vpow2.f32 %v652_v12  ;;  %1178 = vmatpush3.bf16.msra.mxu1 %v1270_v32 }
 0x1d0   : > { %674 = vadd.xlane.f32.xlu0 %v1542_v16  ;;  %v611_v19 = vpop.xlane.xlu0 %610  ;;  %672 = vadd.xlane.f32.xlu1 %v1540_v14 }
 0x1d1   : > { %1295 = vpow2.f32 %v654_v17  ;;  %v656_v20 = vmul.f32 1.442695, %v629_v18  ;;  %v630_v21 = vsub.f32 %v1508_v37, %v611_v19  ;;  %v1548_v22 = vpop.eup %1285  ;;  %1179 = vmatprep.subr.bf16.mxu1 %v1271_v40 }
 0x1d2   : > { %v613_v23 = vpop.xlane.xlu1 %612 }
 0x1d3   : > { %v1550_v24 = vpop.eup %1287  ;;  %v658_v25 = vmul.f32 1.442695, %v630_v21  ;;  %v631_v26 = vsub.f32 %v1513_v39, %v613_v23  ;;  %1297 = vpow2.f32 %v656_v20  ;;  %1180 = vmatpush3.bf16.msra.mxu1 %v1271_v40 }
 0x1d4   : > { %678 = vadd.xlane.f32.xlu0 %v1550_v24  ;;  %v615_v27 = vpop.xlane.xlu0 %614  ;;  %676 = vadd.xlane.f32.xlu1 %v1548_v22 }
 0x1d5   : > { %1299 = vpow2.f32 %v658_v25  ;;  %v660_v28 = vmul.f32 1.442695, %v631_v26  ;;  %v632_v29 = vsub.f32 %v1506_v36, %v615_v27  ;;  %v1556_v30 = vpop.eup %1289  ;;  %1181 = vmatprep.subr.bf16.mxu1 %v1272_v42 }
 0x1d6   : > { %v617_v31 = vpop.xlane.xlu1 %616 }
 0x1d7   : > { %v1559_v33 = vpop.eup %1291  ;;  %v662_v34 = vmul.f32 1.442695, %v632_v29  ;;  %v633_v35 = vsub.f32 %v1511_v38, %v617_v31  ;;  %1301 = vpow2.f32 %v660_v28  ;;  %1182 = vmatpush3.bf16.msra.mxu1 %v1272_v42 }
 0x1d8   : > { %682 = vadd.xlane.f32.xlu0 %v1559_v33  ;;  %680 = vadd.xlane.f32.xlu1 %v1556_v30 }
 0x1d9   : > { %1303 = vpow2.f32 %v662_v34  ;;  %v664_v37 = vmul.f32 1.442695, %v633_v35  ;;  %v1564_v36 = vpop.eup %1293  ;;  %1183 = vmatprep.subr.bf16.mxu1 %v1273_v45 }
 0x1db   : > { %v1566_v39 = vpop.eup %1295  ;;  %1305 = vpow2.f32 %v664_v37  ;;  %1184 = vmatpush3.bf16.msra.mxu1 %v1273_v45 }
 0x1dc   : > { %686 = vadd.xlane.f32.xlu0 %v1566_v39  ;;  %684 = vadd.xlane.f32.xlu1 %v1564_v36 }
 0x1dd   : > { %v1571_v38 = vpop.eup %1297  ;;  %1185 = vmatprep.subr.bf16.mxu1 %v1274_v47 }
 0x1df   : > { %v1573_v41 = vpop.eup %1299  ;;  %1186 = vmatpush3.bf16.msra.mxu1 %v1274_v47 }
 0x1e0   : > { %690 = vadd.xlane.f32.xlu0 %v1573_v41  ;;  %688 = vadd.xlane.f32.xlu1 %v1571_v38 }
 0x1e1   : > { %v1578_v43 = vpop.eup %1301 }
 0x1e3   : > { %v1580_v44 = vpop.eup %1303 }
 0x1e4   : > { %694 = vadd.xlane.f32.xlu0 %v1580_v44  ;;  %692 = vadd.xlane.f32.xlu1 %v1578_v43 }
 0x1e5   : > { %v1585_v46 = vpop.eup %1305 }
 0x1e8   : > { %696 = vadd.xlane.f32.xlu1 %v1585_v46 }
 0x255   : > { %v667_v48 = vpop.xlane.xlu0 %666 }
 0x256   : > { %1307 = vrcp.f32 %v667_v48 }
 0x259   : > { %v671_v49 = vpop.xlane.xlu0 %670  ;;  %v669_v50 = vpop.xlane.xlu1 %668 }
 0x25a   : > { %1309 = vrcp.f32 %v669_v50 }
 0x25b   : > { %1311 = vrcp.f32 %v671_v49 }
 0x25d   : > { %v675_v51 = vpop.xlane.xlu0 %674  ;;  %v673_v52 = vpop.xlane.xlu1 %672 }
 0x25e   : > { %1313 = vrcp.f32 %v673_v52 }
 0x25f   : > { %1315 = vrcp.f32 %v675_v51 }
 0x260   : > { %v1308_v55 = vpop.eup %1307 }
 0x261   : > { %v679_v53 = vpop.xlane.xlu0 %678  ;;  %v677_v54 = vpop.xlane.xlu1 %676  ;;  %v699_v59 = vmul.f32 %v1308_v55, %v1527_v0 }
 0x262   : > { %1317 = vrcp.f32 %v677_v54 }
 0x263   : > { %1319 = vrcp.f32 %v679_v53 }
 0x264   : > { %v1310_v56 = vpop.eup %1309 }
 0x265   : > { %v683_v57 = vpop.xlane.xlu0 %682  ;;  %v681_v58 = vpop.xlane.xlu1 %680  ;;  %v701_v60 = vmul.f32 %v1310_v56, %v1534_v8 }
 0x266   : > { %v1312_v61 = vpop.eup %1311  ;;  %1321 = vrcp.f32 %v681_v58 }
 0x267   : > { %v730_v62 = vpack.c.bf16 %v701_v60, %v699_v59  ;;  %1323 = vrcp.f32 %v683_v57  ;;  %v703_v3 = vmul.f32 %v1312_v61, %v1532_v6 }
 0x268   : > { %v1314_v63 = vpop.eup %1313 }
 0x269   : > { %v687_v1 = vpop.xlane.xlu0 %686  ;;  %v685_v2 = vpop.xlane.xlu1 %684  ;;  %1187 = vmatprep.mubr.bf16.mxu1 %v730_v62  ;;  %v705_v4 = vmul.f32 %v1314_v63, %v1540_v14 }
 0x26a   : > { %v1316_v5 = vpop.eup %1315  ;;  %1325 = vrcp.f32 %v685_v2 }
 0x26b   : > { %v731_v7 = vpack.c.bf16 %v705_v4, %v703_v3  ;;  %1327 = vrcp.f32 %v687_v1  ;;  %v707_v8 = vmul.f32 %v1316_v5, %v1542_v16 }
 0x26c   : > { %v1318_v9 = vpop.eup %1317 }
 0x26d   : > { %v691_v0 = vpop.xlane.xlu0 %690  ;;  %v689_v10 = vpop.xlane.xlu1 %688  ;;  %1188 = vmatmul.mubr.bf16.vlgmr.msra.gmra.mrb[0].mxu1 %v731_v7  ;;  %v709_v11 = vmul.f32 %v1318_v9, %v1548_v22 }
 0x26e   : > { %v1320_v12 = vpop.eup %1319  ;;  %1329 = vrcp.f32 %v689_v10 }
 0x26f   : > { %v732_v13 = vpack.c.bf16 %v709_v11, %v707_v8  ;;  %1331 = vrcp.f32 %v691_v0  ;;  %v711_v14 = vmul.f32 %v1320_v12, %v1550_v24 }
 0x270   : > { %v1322_v15 = vpop.eup %1321 }
 0x271   : > { %v695_v6 = vpop.xlane.xlu0 %694  ;;  %v693_v17 = vpop.xlane.xlu1 %692  ;;  %1191 = vmatprep.mubr.bf16.mxu1 %v732_v13  ;;  %v713_v18 = vmul.f32 %v1322_v15, %v1556_v30 }
 0x272   : > { %v1324_v19 = vpop.eup %1323  ;;  %1333 = vrcp.f32 %v693_v17 }
 0x273   : > { %1335 = vrcp.f32 %v695_v6  ;;  %v733_v20 = vpack.c.bf16 %v713_v18, %v711_v14  ;;  %v715_v22 = vmul.f32 %v1324_v19, %v1559_v33 }
 0x274   : > { %v1326_v21 = vpop.eup %1325 }
 0x275   : > { %v697_v16 = vpop.xlane.xlu1 %696  ;;  %1192 = vmatmul.mubr.bf16.gmra.mrb[4].mxu1 %v733_v20  ;;  %v717_v23 = vmul.f32 %v1326_v21, %v1564_v36  ;;  %v1328_v25 = vpop.eup %1327 }
 0x276   : > { %1337 = vrcp.f32 %v697_v16  ;;  %v719_v24 = vmul.f32 %v1328_v25, %v1566_v39 }
 0x277   : > { %v734_v26 = vpack.c.bf16 %v717_v23, %v715_v22 }
 0x278   : > { %v1330_v27 = vpop.eup %1329 }
 0x279   : > { %1195 = vmatprep.mubr.bf16.mxu1 %v734_v26  ;;  %v721_v28 = vmul.f32 %v1330_v27, %v1571_v38  ;;  %v1332_v29 = vpop.eup %1331 }
 0x27a   : > { %v723_v34 = vmul.f32 %v1332_v29, %v1573_v41 }
 0x27b   : > { %v735_v30 = vpack.c.bf16 %v721_v28, %v719_v24 }
 0x27c   : > { %v1334_v31 = vpop.eup %1333 }
 0x27d   : > { %v1336_v32 = vpop.eup %1335  ;;  %1196 = vmatmul.mubr.bf16.gmra.mrb[8].mxu1 %v735_v30  ;;  %v725_v33 = vmul.f32 %v1334_v31, %v1578_v43 }
 0x27e   : > { %v727_v36 = vmul.f32 %v1336_v32, %v1580_v44 }
 0x27f   : > { %v736_v37 = vpack.c.bf16 %v725_v33, %v723_v34 }
 0x280   : > { %v1338_v35 = vpop.eup %1337 }
 0x281   : > { %v729_v40 = vmul.f32 %v1338_v35, %v1585_v46  ;;  %1199 = vmatprep.mubr.bf16.mxu1 %v736_v37 }
 0x283   : > { %v737_v39 = vpack.c.bf16 %v729_v40, %v727_v36 }
 0x285   : > { %1200 = vmatmul.mubr.bf16.gmra.mrb[12].mxu1 %v737_v39 }
 0x340   : > { %v1189_v38 = vpop.f32.mrb[0].mxu1 }
 0x341   : > { %885 = vst.msk [vmem:[%s1609_s11 + $0x10] sm:$0xff] %vm440_vm0, %v1189_v38  ;;  %v820_v41 = vpop.f32.mrb[1].mxu1 }
 0x342   : > { %883 = vst.msk [vmem:[%s1609_s11] sm:$0xff] %vm440_vm0, %v820_v41  ;;  %v1190_v42 = vpop.f32.mrb[2].mxu1 }
 0x343   : > { %886 = vst.msk [vmem:[%s1609_s11 + $0x18] sm:$0xff] %vm440_vm0, %v1190_v42  ;;  %v823_v43 = vpop.f32.mrb[3].mxu1 }
 0x344   : > { %884 = vst.msk [vmem:[%s1609_s11 + $0x8] sm:$0xff] %vm440_vm0, %v823_v43 }
 0x348   : > { %v1193_v44 = vpop.f32.mrb[4].mxu1 }
 0x349   : > { %889 = vst.msk [vmem:[%s1609_s11 + $0x30] sm:$0xff] %vm440_vm0, %v1193_v44  ;;  %v836_v45 = vpop.f32.mrb[5].mxu1 }
 0x34a   : > { %887 = vst.msk [vmem:[%s1609_s11 + $0x20] sm:$0xff] %vm440_vm0, %v836_v45  ;;  %v1194_v46 = vpop.f32.mrb[6].mxu1 }
 0x34b   : > { %890 = vst.msk [vmem:[%s1609_s11 + $0x38] sm:$0xff] %vm440_vm0, %v1194_v46  ;;  %v839_v47 = vpop.f32.mrb[7].mxu1 }
 0x34c   : > { %888 = vst.msk [vmem:[%s1609_s11 + $0x28] sm:$0xff] %vm440_vm0, %v839_v47 }
 0x350   : > { %v1197_v48 = vpop.f32.mrb[8].mxu1 }
 0x351   : > { %893 = vst.msk [vmem:[%s1609_s11 + $0x50] sm:$0xff] %vm440_vm0, %v1197_v48  ;;  %v852_v49 = vpop.f32.mrb[9].mxu1 }
 0x352   : > { %891 = vst.msk [vmem:[%s1609_s11 + $0x40] sm:$0xff] %vm440_vm0, %v852_v49  ;;  %v1198_v50 = vpop.f32.mrb[10].mxu1 }
 0x353   : > { %894 = vst.msk [vmem:[%s1609_s11 + $0x58] sm:$0xff] %vm440_vm0, %v1198_v50  ;;  %v855_v51 = vpop.f32.mrb[11].mxu1 }
 0x354   : > { %892 = vst.msk [vmem:[%s1609_s11 + $0x48] sm:$0xff] %vm440_vm0, %v855_v51 }
 0x358   : > { %v1201_v52 = vpop.f32.mrb[12].mxu1 }
 0x359   : > { %897 = vst.msk [vmem:[%s1609_s11 + $0x70] sm:$0xff] %vm440_vm0, %v1201_v52  ;;  %v868_v53 = vpop.f32.mrb[13].mxu1 }
 0x35a   : > { %895 = vst.msk [vmem:[%s1609_s11 + $0x60] sm:$0xff] %vm440_vm0, %v868_v53  ;;  %v1202_v54 = vpop.f32.mrb[14].mxu1 }
 0x35b   : > { %898 = vst.msk [vmem:[%s1609_s11 + $0x78] sm:$0xff] %vm440_vm0, %v1202_v54  ;;  %v871_v55 = vpop.f32.mrb[15].mxu1 }
 0x35c   : > { %896 = vst.msk [vmem:[%s1609_s11 + $0x68] sm:$0xff] %vm440_vm0, %v871_v55 }
 0x35d PF: > { %s15_s0 = sadd.s32 1, %s1377_s0   ;;  %s1663_s15 = smov %s1369_s17 }
 0x35e   : > { %p12_p7 = scmp.ge.s32.totalorder %s15_s0, 6   ;;  %s1664_s16 = smov %s1373_s18 }
 0x35f   : > { %s1665_s17 = smov %s1668_s19  ;;  %s1666_s18 = smov %s1672_s20 }
 0x360   :  { %14 = sbr.rel (!%p12_p7) target bundleno = 3 (0x3), region = 68 }

</bundles_post_ra>
